<compile_context>
chip_gen: v6e
topology: v6e:2x2x1
jax: 0.10.0
libtpu: 0.0.40
codegen_flags: <defaults>
</compile_context>

<pallas_src>
import functools

import jax
import jax.numpy as jnp
import numpy as np
from jax.experimental import pallas as pl
from jax.experimental.pallas import tpu as pltpu

EPS = 1e-8


# --------------------------------------------------------------------------
# SI-SDR loss kernel  (asteroid SingleSrcNegSDR('sisdr'), zero_mean=True)
# --------------------------------------------------------------------------
def _neg_sisdr_kernel(n_samples, est_ref, tgt_ref, out_ref,
                      s_e, s_t, s_et, s_ee, s_tt):
    """Accumulates per-row sums over time tiles; finalizes on the last tile."""
    t = pl.program_id(0)

    @pl.when(t == 0)
    def _init():
        s_e[...] = jnp.zeros_like(s_e)
        s_t[...] = jnp.zeros_like(s_t)
        s_et[...] = jnp.zeros_like(s_et)
        s_ee[...] = jnp.zeros_like(s_ee)
        s_tt[...] = jnp.zeros_like(s_tt)

    e = est_ref[...].astype(jnp.float32)
    g = tgt_ref[...].astype(jnp.float32)
    s_e[...] += jnp.sum(e, axis=1, keepdims=True)
    s_t[...] += jnp.sum(g, axis=1, keepdims=True)
    s_et[...] += jnp.sum(e * g, axis=1, keepdims=True)
    s_ee[...] += jnp.sum(e * e, axis=1, keepdims=True)
    s_tt[...] += jnp.sum(g * g, axis=1, keepdims=True)

    @pl.when(t == pl.num_programs(0) - 1)
    def _finalize():
        inv_n = 1.0 / n_samples
        # Zero-mean statistics derived algebraically from raw sums.
        dot = s_et[...] - s_e[...] * s_t[...] * inv_n          # <est_z, tgt_z>
        tgt_energy = s_tt[...] - s_t[...] * s_t[...] * inv_n   # ||tgt_z||^2
        est_energy = s_ee[...] - s_e[...] * s_e[...] * inv_n   # ||est_z||^2
        s_te = tgt_energy + EPS
        alpha = dot / s_te
        num = alpha * alpha * tgt_energy                        # ||scaled_tgt||^2
        e_noise = est_energy - 2.0 * alpha * dot + alpha * alpha * tgt_energy
        den = e_noise + EPS
        out_ref[...] = -10.0 * jnp.log10(num / den + EPS)       # negative SI-SDR


def _pick_time_tile(T):
    """Largest convenient lane-multiple tile that gives >=2 pipeline steps."""
    for tT in (8192, 4096, 2048, 1024, 512, 256, 128):
        if T % tT == 0 and T // tT >= 2:
            return tT
    return T


def neg_sisdr_loss(est, tgt):
    """est, tgt: (B, T) float32 -> scalar mean negative SI-SDR."""
    B, T = est.shape
    tT = _pick_time_tile(T)
    per_ex = pl.pallas_call(
        functools.partial(_neg_sisdr_kernel, float(T)),
        out_shape=jax.ShapeDtypeStruct((B, 1), jnp.float32),
        grid=(T // tT,),
        in_specs=[
            pl.BlockSpec((B, tT), lambda t: (0, t)),
            pl.BlockSpec((B, tT), lambda t: (0, t)),
        ],
        out_specs=pl.BlockSpec((B, 1), lambda t: (0, 0)),
        scratch_shapes=[pltpu.VMEM((B, 1), jnp.float32)] * 5,
        compiler_params=pltpu.CompilerParams(
            dimension_semantics=("arbitrary",)),  # time axis is a reduction
    )(est, tgt)
    return jnp.mean(per_ex)  # wrapper's .mean() (glue)


# --------------------------------------------------------------------------
# PMSQE front-end: STFT encoder (conv1d as framed matmul) + take_mag
# --------------------------------------------------------------------------
KERNEL_SIZE = 512
N_FILTERS = 512
STRIDE = 256
N_FREQ = N_FILTERS // 2 + 1     # 257
NF_PAD = 384                    # 257 padded to a lane multiple (3 * 128)


def _stft_filter_np():
    """Deterministic STFTFB(kernel_size=512, n_filters=512) filters (f32)."""
    n = np.arange(KERNEL_SIZE)
    win = np.hanning(KERNEL_SIZE + 1)[:-1] ** 0.5
    f = np.arange(N_FREQ)[:, None]
    phase = 2.0 * np.pi * f * n[None, :] / N_FILTERS
    scale = 1.0 / np.sqrt(0.5 * N_FILTERS)
    wr = (np.cos(phase) * win[None, :] * scale).astype(np.float32)   # (257, 512)
    wi = (-np.sin(phase) * win[None, :] * scale).astype(np.float32)  # (257, 512)
    return wr, wi


def _make_stft_filterbank():
    """Fused bf16 filterbank split at tap 256 (frame = first half + second half).

    Layout: columns [0:257] real, [384:384+257] imag, zero-padded so both the
    re/im slices and the magnitude store are 128-lane aligned.
    Returns (w_top, w_bot): (256, 768) bf16 each.
    """
    wr, wi = _stft_filter_np()
    w = np.zeros((KERNEL_SIZE, 2 * NF_PAD), np.float32)
    w[:, :N_FREQ] = wr.T
    w[:, NF_PAD:NF_PAD + N_FREQ] = wi.T
    w_top = jnp.asarray(w[:STRIDE], dtype=jnp.bfloat16)
    w_bot = jnp.asarray(w[STRIDE:], dtype=jnp.bfloat16)
    return w_top, w_bot


def _stft_mag_kernel(xa_ref, xb_ref, wt_ref, wb_ref, mag_ref):
    # frame @ W  ==  first_half @ W[:256] + second_half @ W[256:]
    acc = jnp.dot(xa_ref[...], wt_ref[...], preferred_element_type=jnp.float32)
    acc = acc + jnp.dot(xb_ref[...], wb_ref[...],
                        preferred_element_type=jnp.float32)
    re = acc[:, :NF_PAD]
    im = acc[:, NF_PAD:]
    # transforms.take_mag (EPS kept inside the sqrt, matching prior revision).
    mag_ref[...] = jnp.sqrt(re * re + im * im + EPS)


def stft_take_mag(x, w_top, w_bot):
    """x: (B, T) -> magnitudes (B, n_frames, N_FREQ) float32.

    NOTE: layout is (B, n_frames, n_freq); the PyTorch Encoder/take_mag layout
    (B, n_freq, n_frames) would cost an extra HBM transpose pass, so the
    (unimplemented) perceptual consumer is expected to take this layout.
    """
    B, T = x.shape
    assert T % STRIDE == 0 and T >= KERNEL_SIZE, "T must be a multiple of 256"
    n_frames = (T - KERNEL_SIZE) // STRIDE + 1
    M = B * n_frames
    tm = 256 if M >= 256 else 8
    M_pad = ((M + tm - 1) // tm) * tm

    # 50%-overlap framing without materializing an (M, 512) frame tensor:
    # frame f = [x[f*256 : f*256+256], x[f*256+256 : f*256+512]].
    xa = x[:, :n_frames * STRIDE].reshape(M, STRIDE)
    xb = x[:, STRIDE:STRIDE + n_frames * STRIDE].reshape(M, STRIDE)
    pad = M_pad - M
    if pad:
        xa = jnp.pad(xa, ((0, pad), (0, 0)))
        xb = jnp.pad(xb, ((0, pad), (0, 0)))
    xa = xa.astype(jnp.bfloat16)
    xb = xb.astype(jnp.bfloat16)

    mags = pl.pallas_call(
        _stft_mag_kernel,
        out_shape=jax.ShapeDtypeStruct((M_pad, NF_PAD), jnp.float32),
        grid=(M_pad // tm,),
        in_specs=[
            pl.BlockSpec((tm, STRIDE), lambda i: (i, 0)),       # frame tiles
            pl.BlockSpec((tm, STRIDE), lambda i: (i, 0)),
            pl.BlockSpec((STRIDE, 2 * NF_PAD), lambda i: (0, 0)),  # resident W
            pl.BlockSpec((STRIDE, 2 * NF_PAD), lambda i: (0, 0)),
        ],
        out_specs=pl.BlockSpec((tm, NF_PAD), lambda i: (i, 0)),
        compiler_params=pltpu.CompilerParams(
            dimension_semantics=("parallel",)),  # megacore-shardable on v7x
    )(xa, xb, w_top, w_bot)

    return mags[:M, :N_FREQ].reshape(B, n_frames, N_FREQ)


# --------------------------------------------------------------------------
# Wrapper module
# --------------------------------------------------------------------------
class DenoiseLossWrapper:
    def __init__(self, loss_type: str = "sisdr"):
        self.loss_type = loss_type
        if loss_type == "pmsqe":
            self._w_top, self._w_bot = _make_stft_filterbank()

    def __call__(self, est_targets, targets):
        if self.loss_type == "sisdr":
            return neg_sisdr_loss(est_targets, targets)
        elif self.loss_type == "pmsqe":
            est_mag = stft_take_mag(est_targets, self._w_top, self._w_bot)
            tgt_mag = stft_take_mag(targets, self._w_top, self._w_bot)
            # TODO(synk): SingleSrcPMSQE perceptual metric needs the
            # PESQ-standard Bark/loudness tables (not derivable from __init__
            # shapes); only the STFT-magnitude front-end is implemented here.
            raise NotImplementedError("SingleSrcPMSQE perceptual stage not translated")
        else:
            # TODO(synk): stoi/estoi (SingleSrcNegSTOI) need third-octave band
            # matrices and a resampler; no clean in-script Pallas equivalent.
            raise NotImplementedError(self.loss_type)


# --------------------------------------------------------------------------
if __name__ == "__main__":
    key = jax.random.PRNGKey(0)
    k1, k2 = jax.random.split(key)
    B, T = 2, 2048
    targets = jax.random.normal(k1, (B, T), dtype=jnp.float32)
    est_targets = targets + 0.1 * jax.random.normal(k2, (B, T), dtype=jnp.float32)

    # --- SI-SDR path (fully in Pallas, multi-tile accumulation) ---
    wrapper = DenoiseLossWrapper("sisdr")
    loss = wrapper(est_targets, targets)
    jax.block_until_ready(loss)

    # reference check (pure jnp, two-pass formulation)
    def _sisdr_ref(est, tgt):
        est = est - est.mean(axis=1, keepdims=True)
        tgt = tgt - tgt.mean(axis=1, keepdims=True)
        dot = jnp.sum(est * tgt, axis=1, keepdims=True)
        s_te = jnp.sum(tgt * tgt, axis=1, keepdims=True) + EPS
        scaled = dot / s_te * tgt
        e = est - scaled
        l = 10.0 * jnp.log10(jnp.sum(scaled ** 2, 1) / (jnp.sum(e ** 2, 1) + EPS) + EPS)
        return -jnp.mean(l)

    ref_loss = _sisdr_ref(est_targets, targets)
    assert jnp.allclose(loss, ref_loss, rtol=1e-3, atol=1e-3), (loss, ref_loss)

    # --- PMSQE STFT-magnitude Pallas kernel ---
    w_top, w_bot = _make_stft_filterbank()
    mags = stft_take_mag(est_targets, w_top, w_bot)
    jax.block_until_ready(mags)
    n_frames = (T - KERNEL_SIZE) // STRIDE + 1
    assert mags.shape == (B, n_frames, N_FREQ)

    # loose reference check (bf16 MXU vs f32 reference)
    wr, wi = _stft_filter_np()
    idx = (np.arange(n_frames)[:, None] * STRIDE
           + np.arange(KERNEL_SIZE)[None, :])
    frames = np.asarray(est_targets)[:, idx]                 # (B, nf, 512)
    re = frames @ wr.T
    im = frames @ wi.T
    ref_mags = np.sqrt(re * re + im * im + EPS)              # (B, nf, 257)
    assert np.allclose(np.asarray(mags), ref_mags, rtol=0.1, atol=0.1)

    print("KERNEL_OK")
</pallas_src>

<mosaic_0001>
module attributes {stable_mosaic.version = 11 : i64} {
  func.func @_neg_sisdr_kernel(%arg0: i32, %arg1: memref<2x1024xf32, #tpu.memory_space<vmem>>, %arg2: memref<2x1024xf32, #tpu.memory_space<vmem>>, %arg3: memref<2x1xf32, #tpu.memory_space<vmem>>, %arg4: memref<2x1xf32, #tpu.memory_space<vmem>>, %arg5: memref<2x1xf32, #tpu.memory_space<vmem>>, %arg6: memref<2x1xf32, #tpu.memory_space<vmem>>, %arg7: memref<2x1xf32, #tpu.memory_space<vmem>>, %arg8: memref<2x1xf32, #tpu.memory_space<vmem>>) attributes {dimension_semantics = [#tpu.dimension_semantics<arbitrary>], iteration_bounds = array<i64: 2>, scalar_prefetch = 0 : i64, scratch_operands = 5 : i64, tpu.core_type = #tpu.core_type<tc>, window_params = [{transform_indices = @transform_0, window_bounds = array<i64: 2, 1024>}, {transform_indices = @transform_1, window_bounds = array<i64: 2, 1024>}, {pipeline_mode = #tpu.pipeline_mode<synchronous>, transform_indices = @transform_2, window_bounds = array<i64: 2, 1>}]} {
    %c0_i32 = arith.constant 0 : i32
    %0 = arith.cmpi eq, %arg0, %c0_i32 : i32
    %1 = arith.extui %0 : i1 to i32
    %c0_i32_0 = arith.constant 0 : i32
    %2 = arith.cmpi ne, %1, %c0_i32_0 : i32
    scf.if %2 {
      %cst_29 = arith.constant 0.000000e+00 : f32
      %36 = vector.broadcast %cst_29 : f32 to vector<2x1xf32>
      %c0_30 = arith.constant 0 : index
      %c0_31 = arith.constant 0 : index
      %37 = vector.load %arg4[%c0_30, %c0_31] : memref<2x1xf32, #tpu.memory_space<vmem>>, vector<2x1xf32>
      tpu.vector_store %arg4[%c0_30, %c0_31], %36 {strides = array<i32>} : memref<2x1xf32, #tpu.memory_space<vmem>>, vector<2x1xf32>,
      %cst_32 = arith.constant 0.000000e+00 : f32
      %38 = vector.broadcast %cst_32 : f32 to vector<2x1xf32>
      %c0_33 = arith.constant 0 : index
      %c0_34 = arith.constant 0 : index
      %39 = vector.load %arg5[%c0_33, %c0_34] : memref<2x1xf32, #tpu.memory_space<vmem>>, vector<2x1xf32>
      tpu.vector_store %arg5[%c0_33, %c0_34], %38 {strides = array<i32>} : memref<2x1xf32, #tpu.memory_space<vmem>>, vector<2x1xf32>,
      %cst_35 = arith.constant 0.000000e+00 : f32
      %40 = vector.broadcast %cst_35 : f32 to vector<2x1xf32>
      %c0_36 = arith.constant 0 : index
      %c0_37 = arith.constant 0 : index
      %41 = vector.load %arg6[%c0_36, %c0_37] : memref<2x1xf32, #tpu.memory_space<vmem>>, vector<2x1xf32>
      tpu.vector_store %arg6[%c0_36, %c0_37], %40 {strides = array<i32>} : memref<2x1xf32, #tpu.memory_space<vmem>>, vector<2x1xf32>,
      %cst_38 = arith.constant 0.000000e+00 : f32
      %42 = vector.broadcast %cst_38 : f32 to vector<2x1xf32>
      %c0_39 = arith.constant 0 : index
      %c0_40 = arith.constant 0 : index
      %43 = vector.load %arg7[%c0_39, %c0_40] : memref<2x1xf32, #tpu.memory_space<vmem>>, vector<2x1xf32>
      tpu.vector_store %arg7[%c0_39, %c0_40], %42 {strides = array<i32>} : memref<2x1xf32, #tpu.memory_space<vmem>>, vector<2x1xf32>,
      %cst_41 = arith.constant 0.000000e+00 : f32
      %44 = vector.broadcast %cst_41 : f32 to vector<2x1xf32>
      %c0_42 = arith.constant 0 : index
      %c0_43 = arith.constant 0 : index
      %45 = vector.load %arg8[%c0_42, %c0_43] : memref<2x1xf32, #tpu.memory_space<vmem>>, vector<2x1xf32>
      tpu.vector_store %arg8[%c0_42, %c0_43], %44 {strides = array<i32>} : memref<2x1xf32, #tpu.memory_space<vmem>>, vector<2x1xf32>,
    } else {
    }
    %c0 = arith.constant 0 : index
    %c0_1 = arith.constant 0 : index
    %3 = vector.load %arg1[%c0, %c0_1] : memref<2x1024xf32, #tpu.memory_space<vmem>>, vector<2x1024xf32>
    %c0_2 = arith.constant 0 : index
    %c0_3 = arith.constant 0 : index
    %4 = vector.load %arg2[%c0_2, %c0_3] : memref<2x1024xf32, #tpu.memory_space<vmem>>, vector<2x1024xf32>
    %c0_4 = arith.constant 0 : index
    %c0_5 = arith.constant 0 : index
    %5 = vector.load %arg4[%c0_4, %c0_5] : memref<2x1xf32, #tpu.memory_space<vmem>>, vector<2x1xf32>
    %cst = arith.constant dense<0.000000e+00> : vector<2xf32>
    %6 = vector.multi_reduction <add>, %3, %cst [1] : vector<2x1024xf32> to vector<2xf32>
    %7 = vector.shape_cast %6 : vector<2xf32> to vector<2x1xf32>
    %8 = arith.addf %5, %7 : vector<2x1xf32>
    %c0_6 = arith.constant 0 : index
    %c0_7 = arith.constant 0 : index
    %9 = vector.load %arg4[%c0_6, %c0_7] : memref<2x1xf32, #tpu.memory_space<vmem>>, vector<2x1xf32>
    tpu.vector_store %arg4[%c0_6, %c0_7], %8 {strides = array<i32>} : memref<2x1xf32, #tpu.memory_space<vmem>>, vector<2x1xf32>,
    %c0_8 = arith.constant 0 : index
    %c0_9 = arith.constant 0 : index
    %10 = vector.load %arg5[%c0_8, %c0_9] : memref<2x1xf32, #tpu.memory_space<vmem>>, vector<2x1xf32>
    %cst_10 = arith.constant dense<0.000000e+00> : vector<2xf32>
    %11 = vector.multi_reduction <add>, %4, %cst_10 [1] : vector<2x1024xf32> to vector<2xf32>
    %12 = vector.shape_cast %11 : vector<2xf32> to vector<2x1xf32>
    %13 = arith.addf %10, %12 : vector<2x1xf32>
    %c0_11 = arith.constant 0 : index
    %c0_12 = arith.constant 0 : index
    %14 = vector.load %arg5[%c0_11, %c0_12] : memref<2x1xf32, #tpu.memory_space<vmem>>, vector<2x1xf32>
    tpu.vector_store %arg5[%c0_11, %c0_12], %13 {strides = array<i32>} : memref<2x1xf32, #tpu.memory_space<vmem>>, vector<2x1xf32>,
    %c0_13 = arith.constant 0 : index
    %c0_14 = arith.constant 0 : index
    %15 = vector.load %arg6[%c0_13, %c0_14] : memref<2x1xf32, #tpu.memory_space<vmem>>, vector<2x1xf32>
    %16 = arith.mulf %3, %4 : vector<2x1024xf32>
    %cst_15 = arith.constant dense<0.000000e+00> : vector<2xf32>
    %17 = vector.multi_reduction <add>, %16, %cst_15 [1] : vector<2x1024xf32> to vector<2xf32>
    %18 = vector.shape_cast %17 : vector<2xf32> to vector<2x1xf32>
    %19 = arith.addf %15, %18 : vector<2x1xf32>
    %c0_16 = arith.constant 0 : index
    %c0_17 = arith.constant 0 : index
    %20 = vector.load %arg6[%c0_16, %c0_17] : memref<2x1xf32, #tpu.memory_space<vmem>>, vector<2x1xf32>
    tpu.vector_store %arg6[%c0_16, %c0_17], %19 {strides = array<i32>} : memref<2x1xf32, #tpu.memory_space<vmem>>, vector<2x1xf32>,
    %c0_18 = arith.constant 0 : index
    %c0_19 = arith.constant 0 : index
    %21 = vector.load %arg7[%c0_18, %c0_19] : memref<2x1xf32, #tpu.memory_space<vmem>>, vector<2x1xf32>
    %22 = arith.mulf %3, %3 : vector<2x1024xf32>
    %cst_20 = arith.constant dense<0.000000e+00> : vector<2xf32>
    %23 = vector.multi_reduction <add>, %22, %cst_20 [1] : vector<2x1024xf32> to vector<2xf32>
    %24 = vector.shape_cast %23 : vector<2xf32> to vector<2x1xf32>
    %25 = arith.addf %21, %24 : vector<2x1xf32>
    %c0_21 = arith.constant 0 : index
    %c0_22 = arith.constant 0 : index
    %26 = vector.load %arg7[%c0_21, %c0_22] : memref<2x1xf32, #tpu.memory_space<vmem>>, vector<2x1xf32>
    tpu.vector_store %arg7[%c0_21, %c0_22], %25 {strides = array<i32>} : memref<2x1xf32, #tpu.memory_space<vmem>>, vector<2x1xf32>,
    %c0_23 = arith.constant 0 : index
    %c0_24 = arith.constant 0 : index
    %27 = vector.load %arg8[%c0_23, %c0_24] : memref<2x1xf32, #tpu.memory_space<vmem>>, vector<2x1xf32>
    %28 = arith.mulf %4, %4 : vector<2x1024xf32>
    %cst_25 = arith.constant dense<0.000000e+00> : vector<2xf32>
    %29 = vector.multi_reduction <add>, %28, %cst_25 [1] : vector<2x1024xf32> to vector<2xf32>
    %30 = vector.shape_cast %29 : vector<2xf32> to vector<2x1xf32>
    %31 = arith.addf %27, %30 : vector<2x1xf32>
    %c0_26 = arith.constant 0 : index
    %c0_27 = arith.constant 0 : index
    %32 = vector.load %arg8[%c0_26, %c0_27] : memref<2x1xf32, #tpu.memory_space<vmem>>, vector<2x1xf32>
    tpu.vector_store %arg8[%c0_26, %c0_27], %31 {strides = array<i32>} : memref<2x1xf32, #tpu.memory_space<vmem>>, vector<2x1xf32>,
    %c1_i32 = arith.constant 1 : i32
    %33 = arith.cmpi eq, %arg0, %c1_i32 : i32
    %34 = arith.extui %33 : i1 to i32
    %c0_i32_28 = arith.constant 0 : i32
    %35 = arith.cmpi ne, %34, %c0_i32_28 : i32
    scf.if %35 {
      %c0_29 = arith.constant 0 : index
      %c0_30 = arith.constant 0 : index
      %36 = vector.load %arg6[%c0_29, %c0_30] : memref<2x1xf32, #tpu.memory_space<vmem>>, vector<2x1xf32>
      %c0_31 = arith.constant 0 : index
      %c0_32 = arith.constant 0 : index
      %37 = vector.load %arg4[%c0_31, %c0_32] : memref<2x1xf32, #tpu.memory_space<vmem>>, vector<2x1xf32>
      %c0_33 = arith.constant 0 : index
      %c0_34 = arith.constant 0 : index
      %38 = vector.load %arg5[%c0_33, %c0_34] : memref<2x1xf32, #tpu.memory_space<vmem>>, vector<2x1xf32>
      %39 = arith.mulf %37, %38 : vector<2x1xf32>
      %cst_35 = arith.constant 4.8828125E-4 : f32
      %40 = vector.broadcast %cst_35 : f32 to vector<2x1xf32>
      %41 = arith.mulf %39, %40 : vector<2x1xf32>
      %42 = arith.subf %36, %41 : vector<2x1xf32>
      %c0_36 = arith.constant 0 : index
      %c0_37 = arith.constant 0 : index
      %43 = vector.load %arg8[%c0_36, %c0_37] : memref<2x1xf32, #tpu.memory_space<vmem>>, vector<2x1xf32>
      %c0_38 = arith.constant 0 : index
      %c0_39 = arith.constant 0 : index
      %44 = vector.load %arg5[%c0_38, %c0_39] : memref<2x1xf32, #tpu.memory_space<vmem>>, vector<2x1xf32>
      %c0_40 = arith.constant 0 : index
      %c0_41 = arith.constant 0 : index
      %45 = vector.load %arg5[%c0_40, %c0_41] : memref<2x1xf32, #tpu.memory_space<vmem>>, vector<2x1xf32>
      %46 = arith.mulf %44, %45 : vector<2x1xf32>
      %cst_42 = arith.constant 4.8828125E-4 : f32
      %47 = vector.broadcast %cst_42 : f32 to vector<2x1xf32>
      %48 = arith.mulf %46, %47 : vector<2x1xf32>
      %49 = arith.subf %43, %48 : vector<2x1xf32>
      %c0_43 = arith.constant 0 : index
      %c0_44 = arith.constant 0 : index
      %50 = vector.load %arg7[%c0_43, %c0_44] : memref<2x1xf32, #tpu.memory_space<vmem>>, vector<2x1xf32>
      %c0_45 = arith.constant 0 : index
      %c0_46 = arith.constant 0 : index
      %51 = vector.load %arg4[%c0_45, %c0_46] : memref<2x1xf32, #tpu.memory_space<vmem>>, vector<2x1xf32>
      %c0_47 = arith.constant 0 : index
      %c0_48 = arith.constant 0 : index
      %52 = vector.load %arg4[%c0_47, %c0_48] : memref<2x1xf32, #tpu.memory_space<vmem>>, vector<2x1xf32>
      %53 = arith.mulf %51, %52 : vector<2x1xf32>
      %cst_49 = arith.constant 4.8828125E-4 : f32
      %54 = vector.broadcast %cst_49 : f32 to vector<2x1xf32>
      %55 = arith.mulf %53, %54 : vector<2x1xf32>
      %56 = arith.subf %50, %55 : vector<2x1xf32>
      %cst_50 = arith.constant 9.99999993E-9 : f32
      %57 = vector.broadcast %cst_50 : f32 to vector<2x1xf32>
      %58 = arith.addf %49, %57 : vector<2x1xf32>
      %59 = arith.divf %42, %58 : vector<2x1xf32>
      %60 = arith.mulf %59, %59 : vector<2x1xf32>
      %61 = arith.mulf %60, %49 : vector<2x1xf32>
      %cst_51 = arith.constant 2.000000e+00 : f32
      %62 = vector.broadcast %cst_51 : f32 to vector<2x1xf32>
      %63 = arith.mulf %62, %59 : vector<2x1xf32>
      %64 = arith.mulf %63, %42 : vector<2x1xf32>
      %65 = arith.subf %56, %64 : vector<2x1xf32>
      %66 = arith.mulf %59, %59 : vector<2x1xf32>
      %67 = arith.mulf %66, %49 : vector<2x1xf32>
      %68 = arith.addf %65, %67 : vector<2x1xf32>
      %cst_52 = arith.constant 9.99999993E-9 : f32
      %69 = vector.broadcast %cst_52 : f32 to vector<2x1xf32>
      %70 = arith.addf %68, %69 : vector<2x1xf32>
      %71 = arith.divf %61, %70 : vector<2x1xf32>
      %cst_53 = arith.constant 9.99999993E-9 : f32
      %72 = vector.broadcast %cst_53 : f32 to vector<2x1xf32>
      %73 = arith.addf %71, %72 : vector<2x1xf32>
      %74 = math.log %73 : vector<2x1xf32>
      %cst_54 = arith.constant 0.434294492 : f32
      %75 = vector.broadcast %cst_54 : f32 to vector<2x1xf32>
      %76 = arith.mulf %74, %75 : vector<2x1xf32>
      %cst_55 = arith.constant -1.000000e+01 : f32
      %77 = vector.broadcast %cst_55 : f32 to vector<2x1xf32>
      %78 = arith.mulf %77, %76 : vector<2x1xf32>
      %c0_56 = arith.constant 0 : index
      %c0_57 = arith.constant 0 : index
      %79 = vector.load %arg3[%c0_56, %c0_57] : memref<2x1xf32, #tpu.memory_space<vmem>>, vector<2x1xf32>
      tpu.vector_store %arg3[%c0_56, %c0_57], %78 {strides = array<i32>} : memref<2x1xf32, #tpu.memory_space<vmem>>, vector<2x1xf32>,
    } else {
    }
    return
  }
  func.func @transform_0(%arg0: i32) -> (i32, i32) {
    %c0_i32 = arith.constant 0 : i32
    %c0_i32_0 = arith.constant 0 : i32
    return %c0_i32, %arg0 : i32, i32
  }
  func.func @transform_1(%arg0: i32) -> (i32, i32) {
    %c0_i32 = arith.constant 0 : i32
    %c0_i32_0 = arith.constant 0 : i32
    return %c0_i32, %arg0 : i32, i32
  }
  func.func @transform_2(%arg0: i32) -> (i32, i32) {
    %c0_i32 = arith.constant 0 : i32
    %c0_i32_0 = arith.constant 0 : i32
    %c0_i32_1 = arith.constant 0 : i32
    return %c0_i32, %c0_i32_0 : i32, i32
  }
}

</mosaic_0001>

<bundles_post_ra>
// kernel: tpu_custom_call.1
= control target key start
LH: loop header
LB: loop body
LE: loop exit
PB: predicated region body
PF: predicated region fallthrough
CT: control target
= control target key end

     0   :  { %7 = vsyncpa [#allocation8], 0  ;;  %s1059_s0 = inlined_call_operand.hbm [shape: f32[2,2048], index: 0, kind: input, shape index: {}]   ;;  %s1060_s1 = inlined_call_operand.hbm [shape: f32[2,2048], index: 1, kind: input, shape index: {}]   ;;  %s1061_s2 = inlined_call_operand.vmem [shape: f32[2,1], index: 2, kind: output, shape index: {}]  }
   0x1   :  { %9 = vsyncpa [#allocation8 + $0x1], 0 }
   0x2   :  { %10 = vsyncpa [#allocation10], 0 }
   0x3   :  { %12 = vsyncpa [#allocation10 + $0x1], 0  ;;  %s816_s9 = smov 0   ;;  %s818_s10 = smov 0  }
   0x4   :  { %s820_s11 = smov 0   ;;  %s822_s12 = smov 0  }
   0x5 LB: > { %s835_s13 = sadd.s32 4294967295, %s795_s12   ;;  %s838_s14 = sadd.s32 1, %s795_s12   ;;  %s795_s12 = sphi %s822_s12, %s1073_s12   ;;  %s791_s11 = sphi %s820_s11, %s1072_s11   ;;  %s787_s10 = sphi %s818_s10, %s1071_s10   ;;  %s783_s9 = sphi %s816_s9, %s1070_s9  }
   0x6   : > { %s22_s15 = ssub.s32 %s795_s12, %s838_s14  ;;  %s25_s16 = sadd.s32 1, %s791_s11 }
   0x7   : > { %p23_p0 = scmp.eq.s32.totalorder %s22_s15, 0  ;;  %p32_p1 = scmp.ne.s32.totalorder %s791_s11, %s787_s10 }
   0x8   : > { %p33_p2 = scmp.eq.s32.totalorder %s795_s12, 0  ;;  %p38_p3 = scmp.ne.s32.totalorder %s787_s10, %s783_s9 }
   0x9   : > { %s848_s17 = scalar_select %p23_p0, %s791_s11, %s25_s16  }
   0xa   : > { %p34_p4 = por %p33_p2, %p32_p1  ;;  %p39_p5 = scmp.eq.s32.totalorder %s835_s13, 0 }
   0xb   : > { %p656_p6 = scmp.lt.s32.totalorder %s795_s12, 2  ;;  %s857_s19 = sand.u32 1, %s791_s11  }
   0xc   : > { %p852_p7 = por %p39_p5, %p38_p3  ;;  %s630_s20 = sshll.u32 %s857_s19, 4 }
   0xd   : > { %s643_s21 = sshll.u32 %s795_s12, 8  ;;  %s113_s25 = scalar_lea.vmem [#allocation7], %s630_s20 }
   0xe   : > { %s1063_s18 = scalar_select %p852_p7, 1, 0 }
   0xf   : > { %s866_s24 = scalar_lea.hbm %s1059_s0, %s643_s21  ;;  %s121_s26 = sshll.u32 %s113_s25, 4  ;;  %s870_s26 = int_to_ptr.vmem [resolvable:$true] %s121_s26 }
  0x10   : > { %p872_p8 = pnand %p656_p6, %p34_p4  ;;  %s110_s28 = scalar_lea.sflag [#allocation8], %s857_s19 }
  0x11   : > { %s701_s29 = scalar_lea.hbm %s866_s24, 256  ;;  %s706_s4 = scalar_lea.hbm %s1059_s0, 512 }
  0x12   : > { %p702_p11 = scmp.ne.s32.totalorder %s866_s24, %s701_s29  ;;  %p703_p12 = pneg %p872_p8 }
  0x13   : > { %p707_p1 = scmp.lt.s32.totalorder %s866_s24, %s1059_s0  ;;  %p708_p2 = scmp.lt.s32.totalorder %s706_s4, %s701_s29 }
  0x14   : > { %p704_p13 = pnand %p703_p12, %p702_p11 }
  0x15   : > { %p709_p3 = por %p708_p2, %p707_p1 }
  0x16   : > { %p705_p0 = pneg %p704_p13 }
  0x18   : > { %p710_p4 = pnand %p709_p3, %p705_p0 }
  0x1a   : > { %713 = shalt.err (!%p710_p4)
}
  0x1b   : > { %s714_s7 = scalar_lea.vmem %s870_s26, 256  ;;  %s797_s8 = smov [#allocation7]  }
  0x1c   : > { %p715_p5 = scmp.ne.s32.totalorder %s870_s26, %s714_s7  ;;  %s719_s9 = sshll.u32 %s797_s8, 4  ;;  %s720_s9 = int_to_ptr.vmem [resolvable:$false] %s719_s9 }
  0x1d   : > { %s721_s15 = scalar_lea.vmem %s720_s9, 512  ;;  %p722_p13 = scmp.lt.s32.totalorder %s870_s26, %s720_s9 }
  0x1e   : > { %p717_p6 = pnand %p715_p5, %p703_p12  ;;  %p723_p9 = scmp.lt.s32.totalorder %s721_s15, %s714_s7 }
  0x20   : > { %p718_p11 = pneg %p717_p6  ;;  %p724_p10 = por %p723_p9, %p722_p13 }
  0x22   : > { %p725_p1 = pnand %p724_p10, %p718_p11 }
  0x24   : > { %728 = shalt.err (!%p725_p1)
}
  0x25   : > { %652 = dma.hbm_to_vmem [thread:$0]  (!%p872_p8), %s866_s24, 256, %s870_s26, %s110_s28  }
  0x26   : > { %p1065_p0 = scmp.lt.s32.totalorder %s795_s12, 3  ;;  %p1066_p2 = scmp.ge.s32.totalorder %s795_s12, 1 }
  0x27   : > { %s916_s25 = scalar_lea.hbm %s1060_s1, %s643_s21  ;;  %s132_s29 = scalar_lea.vmem [#allocation9], %s630_s20 }
  0x28   : > { %p907_p3 = pnand %p1066_p2, %p1065_p0  ;;  %s140_s30 = sshll.u32 %s132_s29, 4  ;;  %s141_s30 = int_to_ptr.vmem [resolvable:$true] %s140_s30 }
  0x29   : > { %s129_s24 = scalar_lea.sflag [#allocation10], %s857_s19  ;;  %s729_s26 = scalar_lea.hbm %s916_s25, 256 }
  0x2a   : > { %s1067_s16 = scalar_select %p907_p3, 1, 0 }
  0x2b   : > { %p730_p9 = scmp.ne.s32.totalorder %s916_s25, %s729_s26  ;;  %s734_s3 = scalar_lea.hbm %s1060_s1, 512 }
  0x2c   : > { %p735_p5 = scmp.lt.s32.totalorder %s916_s25, %s1060_s1  ;;  %p736_p6 = scmp.lt.s32.totalorder %s734_s3, %s729_s26 }
  0x2d   : > { %p732_p10 = pnand %p730_p9, %p703_p12 }
  0x2e   : > { %p737_p11 = por %p736_p6, %p735_p5 }
  0x2f   : > { %p733_p4 = pneg %p732_p10 }
  0x31   : > { %p738_p13 = pnand %p737_p11, %p733_p4 }
  0x33   : > { %741 = shalt.err (!%p738_p13)
}
  0x34   : > { %s742_s20 = scalar_lea.vmem %s141_s30, 256  ;;  %s798_s19 = smov [#allocation9]  }
  0x35   : > { %p743_p1 = scmp.ne.s32.totalorder %s141_s30, %s742_s20  ;;  %s747_s5 = sshll.u32 %s798_s19, 4  ;;  %s748_s5 = int_to_ptr.vmem [resolvable:$false] %s747_s5 }
  0x36   : > { %s749_s6 = scalar_lea.vmem %s748_s5, 512  ;;  %p750_p9 = scmp.lt.s32.totalorder %s141_s30, %s748_s5 }
  0x37   : > { %p745_p0 = pnand %p743_p1, %p703_p12  ;;  %p751_p10 = scmp.lt.s32.totalorder %s749_s6, %s742_s20 }
  0x39   : > { %p746_p2 = pneg %p745_p0  ;;  %p752_p7 = por %p751_p10, %p750_p9 }
  0x3b   : > { %p753_p3 = pnand %p752_p7, %p746_p2 }
  0x3d   : > { %756 = shalt.err (!%p753_p3)
}
  0x3e   : > { %655 = dma.hbm_to_vmem [thread:$0]  (!%p872_p8), %s916_s25, 256, %s141_s30, %s129_s24  }
  0x3f   : > { %p1068_p4 = scmp.ne.s32.totalorder %s1067_s16, 0 }
  0x40   : > { %s151_s7 = sand.u32 (!%p1068_p4), 1, %s787_s10   ;;  %p1069_p12 = scmp.ne.s32.totalorder (!%p1068_p4), %s1063_s18, 0 }
  0x41   : > { %149 = sbr.rel (%p1068_p4) target bundleno = 347 (0x15b), region = 28  ;;  %s637_s8 = sshll.u32 (!%p1068_p4), %s151_s7, 4 }
  0x42   : > { %s152_s9 = scalar_lea.sflag (!%p1068_p4), [#allocation8], %s151_s7  ;;  %s155_s15 = scalar_lea.vmem (!%p1068_p4), [#allocation7], %s637_s8 }
  0x46   : > { %774 = dma.done.wait (%p1069_p12), %s152_s9, 256  }
  0x47   : > { %776 = vsyncadd (%p1069_p12), %s152_s9, 4294967040  ;;  %s161_s22 = scalar_lea.sflag [#allocation10], %s151_s7  ;;  %s164_s23 = scalar_lea.vmem [#allocation9], %s637_s8 }
  0x48   : > { %778 = dma.done.wait (%p1069_p12), %s161_s22, 256  }
  0x49   : > { %780 = vsyncadd (%p1069_p12), %s161_s22, 4294967040  ;;  %p639_p7 = scmp.ne.s32.totalorder %s835_s13, 0 }
  0x4b   : > { %190 = sbr.rel (%p639_p7) target bundleno = 84 (0x54), region = 40 }
  0x50   : > { %vm191_vm0 = vcmask 1024   ;;  %v799_v0 = vmov 0.0  }
  0x51   : > { %192 = vst.msk [vmem:[#allocation2] sm:$0x3] %vm191_vm0, %v799_v0  ;;  %193 = vst.msk [vmem:[#allocation3] sm:$0x3] %vm191_vm0, %v799_v0 }
  0x52   : > { %194 = vst.msk [vmem:[#allocation4] sm:$0x3] %vm191_vm0, %v799_v0  ;;  %195 = vst.msk [vmem:[#allocation5] sm:$0x3] %vm191_vm0, %v799_v0 }
  0x53   : > { %196 = vst.msk [vmem:[#allocation6] sm:$0x3] %vm191_vm0, %v799_v0 }
  0x54 PF: > { %v208_v1 = vlaneseq  ;;  %v199_v2 = vld [vmem:[%s164_s23] sm:$0xff]  ;;  %v800_v4 = vmov 1983009808   ;;  %v200_v6 = vld [vmem:[%s164_s23 + $0x8] sm:$0xff]  ;;  %vm246_vm1 = vcmask 1041408   ;;  %vm265_vm2 = vcmask 1024  }
  0x55   : > { %v197_v3 = vld [vmem:[%s155_s15] sm:$0xff]  ;;  %v206_v5 = vunpack.c.l.s4 %v800_v4  ;;  %v198_v7 = vld [vmem:[%s155_s15 + $0x8] sm:$0xff]  ;;  %v270_v16 = vcombine.high %v199_v2, %v199_v2  ;;  %v287_v17 = vcombine.high %v200_v6, %v200_v6  ;;  %v957_v21 = vmul.f32 %v199_v2, %v199_v2  ;;  %p640_p8 = scmp.ne.s32.totalorder %s835_s13, 1 }
  0x56   : > { %v209_v8 = vshrl.u32 %v208_v1, 7  ;;  %v332_v9 = vmul.f32 %v199_v2, %v197_v3  ;;  %v204_v10 = vcombine.high %v197_v3, %v197_v3  ;;  %v221_v12 = vcombine.high %v198_v7, %v198_v7 }
  0x57   : > { %v207_v11 = vunpack.c.0.s8 %v206_v5  ;;  %v333_v13 = vmul.f32 %v200_v6, %v198_v7  ;;  %v953_v18 = vmul.f32 %v197_v3, %v197_v3  ;;  %v955_v20 = vmul.f32 %v198_v7, %v198_v7 }
  0x58   : > { %v336_v14 = vcombine.high %v332_v9, %v332_v9  ;;  %v959_v22 = vmul.f32 %v200_v6, %v200_v6  ;;  %v468_v38 = vcombine.high %v957_v21, %v957_v21 }
  0x59   : > { %v951_v15 = vsub.s32 %v207_v11, %v209_v8  ;;  %v353_v19 = vcombine.high %v333_v13, %v333_v13  ;;  %v402_v30 = vcombine.high %v953_v18, %v953_v18  ;;  %v419_v37 = vcombine.high %v955_v20, %v955_v20 }
  0x5b   : > { %v211_v23 = vrot.slane %v197_v3, %v951_v15  ;;  %v218_v24 = vrot.slane %v204_v10, %v951_v15  ;;  %v228_v25 = vrot.slane %v198_v7, %v951_v15  ;;  %v235_v26 = vrot.slane %v221_v12, %v951_v15 }
  0x5c   : > { %v343_v27 = vrot.slane %v332_v9, %v951_v15  ;;  %v350_v28 = vrot.slane %v336_v14, %v951_v15  ;;  %v360_v29 = vrot.slane %v333_v13, %v951_v15  ;;  %v367_v36 = vrot.slane %v353_v19, %v951_v15 }
  0x5d   : > { %v219_v31 = vcombine.high %v211_v23, %v211_v23  ;;  %v220_v32 = vcombine.high %v218_v24, %v218_v24  ;;  %v236_v33 = vcombine.high %v228_v25, %v228_v25  ;;  %v237_v34 = vcombine.high %v235_v26, %v235_v26 }
  0x5e   : > { %v247_v35 = vsel %vm246_vm1, %v211_v23, 0.0  ;;  %v250_v40 = vsel %vm246_vm1, %v218_v24, 0.0  ;;  %v254_v41 = vsel %vm246_vm1, %v228_v25, 0.0  ;;  %v258_v42 = vsel %vm246_vm1, %v235_v26, 0.0 }
  0x5f   : > { %v248_v39 = vsel %vm246_vm1, %v219_v31, 0.0  ;;  %v252_v44 = vsel %vm246_vm1, %v220_v32, 0.0  ;;  %v351_v45 = vcombine.high %v343_v27, %v343_v27  ;;  %v352_v46 = vcombine.high %v350_v28, %v350_v28 }
  0x60   : > { %v249_v43 = vadd.f32 %v248_v39, %v247_v35  ;;  %v256_v47 = vsel %vm246_vm1, %v236_v33, 0.0  ;;  %v260_v48 = vsel %vm246_vm1, %v237_v34, 0.0  ;;  %v368_v49 = vcombine.high %v360_v29, %v360_v29 }
  0x61   : > { %v378_v50 = vsel %vm246_vm1, %v343_v27, 0.0  ;;  %v369_v52 = vcombine.high %v367_v36, %v367_v36  ;;  %v379_v53 = vsel %vm246_vm1, %v351_v45, 0.0  ;;  %v381_v54 = vsel %vm246_vm1, %v350_v28, 0.0 }
  0x62   : > { %v251_v51 = vadd.f32 %v250_v40, %v249_v43  ;;  %v380_v55 = vadd.f32 %v379_v53, %v378_v50  ;;  %v383_v56 = vsel %vm246_vm1, %v352_v46, 0.0  ;;  %v385_v57 = vsel %vm246_vm1, %v360_v29, 0.0 }
  0x63   : > { %v277_v58 = vrot.slane %v199_v2, %v951_v15  ;;  %v284_v60 = vrot.slane %v270_v16, %v951_v15  ;;  %v294_v61 = vrot.slane %v200_v6, %v951_v15  ;;  %v301_v62 = vrot.slane %v287_v17, %v951_v15 }
  0x64   : > { %v253_v59 = vadd.f32 %v252_v44, %v251_v51  ;;  %v382_v63 = vadd.f32 %v381_v54, %v380_v55  ;;  %v387_v0 = vsel %vm246_vm1, %v368_v49, 0.0  ;;  %v389_v5 = vsel %vm246_vm1, %v367_v36, 0.0 }
  0x65   : > { %v285_v1 = vcombine.high %v277_v58, %v277_v58  ;;  %v312_v3 = vsel %vm246_vm1, %v277_v58, 0.0  ;;  %v286_v7 = vcombine.high %v284_v60, %v284_v60  ;;  %v409_v2 = vrot.slane %v953_v18, %v951_v15 }
  0x66   : > { %v255_v4 = vadd.f32 %v254_v41, %v253_v59  ;;  %v384_v8 = vadd.f32 %v383_v56, %v382_v63  ;;  %v302_v9 = vcombine.high %v294_v61, %v294_v61  ;;  %v315_v6 = vsel %vm246_vm1, %v284_v60, 0.0 }
  0x67   : > { %v313_v10 = vsel %vm246_vm1, %v285_v1, 0.0  ;;  %v391_v12 = vsel %vm246_vm1, %v369_v52, 0.0  ;;  %v303_v13 = vcombine.high %v301_v62, %v301_v62  ;;  %v317_v17 = vsel %vm246_vm1, %v286_v7, 0.0 }
  0x68   : > { %v257_v11 = vadd.f32 %v256_v47, %v255_v4  ;;  %v314_v14 = vadd.f32 %v313_v10, %v312_v3  ;;  %v386_v16 = vadd.f32 %v385_v57, %v384_v8  ;;  %v319_v19 = vsel %vm246_vm1, %v294_v61, 0.0 }
  0x69   : > { %v416_v23 = vrot.slane %v402_v30, %v951_v15  ;;  %v417_v25 = vcombine.high %v409_v2, %v409_v2  ;;  %v426_v26 = vrot.slane %v955_v20, %v951_v15  ;;  %v321_v28 = vsel %vm246_vm1, %v302_v9, 0.0 }
  0x6a   : > { %v259_v24 = vadd.f32 %v258_v42, %v257_v11  ;;  %v316_v18 = vadd.f32 %v315_v6, %v314_v14  ;;  %v388_v27 = vadd.f32 %v387_v0, %v386_v16  ;;  %v444_v31 = vsel %vm246_vm1, %v409_v2, 0.0  ;;  %v201_v14 = vld [vmem:[#allocation2] sm:$0x3] }
  0x6b   : > { %v418_v29 = vcombine.high %v416_v23, %v416_v23  ;;  %v433_v34 = vrot.slane %v419_v37, %v951_v15  ;;  %v445_v35 = vsel %vm246_vm1, %v417_v25, 0.0  ;;  %v434_v30 = vcombine.high %v426_v26, %v426_v26 }
  0x6c   : > { %v261_v32 = vadd.f32 %v260_v48, %v259_v24  ;;  %v318_v33 = vadd.f32 %v317_v17, %v316_v18  ;;  %v390_v36 = vadd.f32 %v389_v5, %v388_v27  ;;  %v446_v39 = vadd.f32 %v445_v35, %v444_v31  ;;  %v267_v18 = vld [vmem:[#allocation3] sm:$0x3]  ;;  %v397_v27 = vld [vmem:[#allocation5] sm:$0x3]  ;;  %v463_v31 = vld [vmem:[#allocation6] sm:$0x3] }
  0x6d   : > { %v447_v40 = vsel %vm246_vm1, %v416_v23, 0.0  ;;  %v449_v20 = vsel %vm246_vm1, %v418_v29, 0.0  ;;  %v323_v43 = vsel %vm246_vm1, %v301_v62, 0.0  ;;  %v485_v45 = vcombine.high %v959_v22, %v959_v22 }
  0x6e   : > { %262 = vadd.xlane.f32.xlu0 %v261_v32  ;;  %v320_v41 = vadd.f32 %v319_v19, %v318_v33  ;;  %v392_v42 = vadd.f32 %v391_v12, %v390_v36  ;;  %v448_v44 = vadd.f32 %v447_v40, %v446_v39  ;;  %v451_v37 = vsel %vm246_vm1, %v426_v26, 0.0  ;;  %v331_v19 = vld [vmem:[#allocation4] sm:$0x3] }
  0x6f   : > { %v475_v47 = vrot.slane %v957_v21, %v951_v15  ;;  %v482_v48 = vrot.slane %v468_v38, %v951_v15  ;;  %v325_v49 = vsel %vm246_vm1, %v303_v13, 0.0  ;;  %v435_v50 = vcombine.high %v433_v34, %v433_v34 }
  0x70   : > { %v322_v46 = vadd.f32 %v321_v28, %v320_v41  ;;  %393 = vadd.xlane.f32.xlu1 %v392_v42  ;;  %v450_v51 = vadd.f32 %v449_v20, %v448_v44  ;;  %v453_v52 = vsel %vm246_vm1, %v434_v30, 0.0  ;;  %v492_v56 = vrot.slane %v959_v22, %v951_v15 }
  0x71   : > { %v483_v54 = vcombine.high %v475_v47, %v475_v47  ;;  %v484_v55 = vcombine.high %v482_v48, %v482_v48  ;;  %v510_v58 = vsel %vm246_vm1, %v475_v47, 0.0  ;;  %v455_v21 = vsel %vm246_vm1, %v433_v34, 0.0 }
  0x72   : > { %v324_v53 = vadd.f32 %v323_v43, %v322_v46  ;;  %v452_v57 = vadd.f32 %v451_v37, %v450_v51  ;;  %v513_v60 = vsel %vm246_vm1, %v482_v48, 0.0  ;;  %v457_v63 = vsel %vm246_vm1, %v435_v50, 0.0 }
  0x73   : > { %v511_v38 = vsel %vm246_vm1, %v483_v54, 0.0  ;;  %v499_v0 = vrot.slane %v485_v45, %v951_v15  ;;  %v500_v1 = vcombine.high %v492_v56, %v492_v56  ;;  %v515_v22 = vsel %vm246_vm1, %v484_v55, 0.0 }
  0x74   : > { %v326_v59 = vadd.f32 %v325_v49, %v324_v53  ;;  %v454_v61 = vadd.f32 %v453_v52, %v452_v57  ;;  %v512_v62 = vadd.f32 %v511_v38, %v510_v58  ;;  %v517_v5 = vsel %vm246_vm1, %v492_v56, 0.0 }
  0x75   : > { %v501_v8 = vcombine.high %v499_v0, %v499_v0  ;;  %v519_v9 = vsel %vm246_vm1, %v500_v1, 0.0  ;;  %v521_v6 = vsel %vm246_vm1, %v499_v0, 0.0 }
  0x76   : > { %327 = vadd.xlane.f32.xlu0 %v326_v59  ;;  %v456_v3 = vadd.f32 %v455_v21, %v454_v61  ;;  %v514_v4 = vadd.f32 %v513_v60, %v512_v62 }
  0x77   : > { %v523_v12 = vsel %vm246_vm1, %v501_v8, 0.0 }
  0x78   : > { %v458_v7 = vadd.f32 %v457_v63, %v456_v3  ;;  %v516_v2 = vadd.f32 %v515_v22, %v514_v4 }
  0x7a   : > { %459 = vadd.xlane.f32.xlu1 %v458_v7  ;;  %v518_v10 = vadd.f32 %v517_v5, %v516_v2 }
  0x7c   : > { %v520_v11 = vadd.f32 %v519_v9, %v518_v10 }
  0x7e   : > { %v522_v15 = vadd.f32 %v521_v6, %v520_v11 }
  0x80   : > { %v524_v13 = vadd.f32 %v523_v12, %v522_v15 }
  0x82   : > { %525 = vadd.xlane.f32.xlu0 %v524_v13 }
  0xf7   : > { %v263_v16 = vpop.xlane.xlu0 %262 }
  0xf8   : > { %v264_v17 = vadd.f32 %v263_v16, %v201_v14 }
  0xf9   : > { %v394_v23 = vpop.xlane.xlu1 %393 }
  0xfa   : > { %266 = vst.msk [vmem:[#allocation2] sm:$0x3] %vm265_vm2, %v264_v17  ;;  %v395_v24 = vadd.f32 %v394_v23, %v331_v19 }
  0xfc   : > { %396 = vst.msk [vmem:[#allocation4] sm:$0x3] %vm265_vm2, %v395_v24 }
  0xff   : > { %v328_v25 = vpop.xlane.xlu0 %327 }
 0x100   : > { %v329_v26 = vadd.f32 %v328_v25, %v267_v18 }
 0x102   : > { %330 = vst.msk [vmem:[#allocation3] sm:$0x3] %vm265_vm2, %v329_v26 }
 0x103   : > { %v460_v28 = vpop.xlane.xlu1 %459 }
 0x104   : > { %v461_v29 = vadd.f32 %v460_v28, %v397_v27 }
 0x106   : > { %462 = vst.msk [vmem:[#allocation5] sm:$0x3] %vm265_vm2, %v461_v29 }
 0x10a   : > { %532 = sbr.rel (%p640_p8) target bundleno = 347 (0x15b), region = 44 }
 0x10b   : > { %v526_v32 = vpop.xlane.xlu0 %525 }
 0x10c   : > { %v527_v33 = vadd.f32 %v526_v32, %v463_v31 }
 0x10e   : > { %528 = vst.msk [vmem:[#allocation6] sm:$0x3] %vm265_vm2, %v527_v33 }
 0x10f   : > { %v535_v34 = vld [vmem:[#allocation3] sm:$0x3]  ;;  %v534_v41 = vld [vmem:[#allocation2] sm:$0x3]  ;;  %v533_v43 = vld [vmem:[#allocation4] sm:$0x3] }
 0x110   : > { %v540_v35 = vmul.f32 %v535_v34, %v535_v34  ;;  %v536_v20 = vmul.f32 %v535_v34, %v534_v41  ;;  %v544_v44 = vmul.f32 %v534_v41, %v534_v41  ;;  %v543_v47 = vld [vmem:[#allocation5] sm:$0x3] }
 0x112   : > { %v541_v30 = vmul.f32 0.00048828125, %v540_v35  ;;  %v537_v42 = vmul.f32 0.00048828125, %v536_v20  ;;  %v545_v46 = vmul.f32 0.00048828125, %v544_v44 }
 0x114   : > { %v538_v45 = vsub.f32 %v533_v43, %v537_v42  ;;  %v546_v49 = vsub.f32 %v543_v47, %v545_v46 }
 0x115   : > { %v539_v36 = vld [vmem:[#allocation6] sm:$0x3] }
 0x116   : > { %v542_v39 = vsub.f32 %v539_v36, %v541_v30 }
 0x118   : > { %v547_v40 = vadd.f32 1e-08, %v542_v39 }
 0x11a   : > { %695 = vrcp.f32 %v547_v40 }
 0x127   : > { %v696_v37 = vpop.eup %695 }
 0x128   : > { %v549_v48 = vmul.f32 %v696_v37, %v538_v45 }
 0x12a   : > { %v550_v50 = vmul.f32 %v549_v48, %v549_v48  ;;  %v552_v51 = vmul.f32 2.0, %v549_v48 }
 0x12c   : > { %v551_v52 = vmul.f32 %v550_v50, %v542_v39  ;;  %v553_v53 = vmul.f32 %v552_v51, %v538_v45 }
 0x12e   : > { %v554_v54 = vsub.f32 %v546_v49, %v553_v53 }
 0x130   : > { %v555_v55 = vadd.f32 %v554_v54, %v551_v52 }
 0x132   : > { %v556_v56 = vadd.f32 1e-08, %v555_v55 }
 0x134   : > { %697 = vrcp.f32 %v556_v56 }
 0x141   : > { %v698_v57 = vpop.eup %697 }
 0x142   : > { %v558_v58 = vmul.f32 %v698_v57, %v551_v52 }
 0x144   : > { %v559_v59 = vadd.f32 1e-08, %v558_v58 }
 0x146   : > { %699 = vlog2.f32 %v559_v59 }
 0x153   : > { %v700_v21 = vpop.eup %699 }
 0x154   : > { %v561_v38 = vmul.f32 0.6931472, %v700_v21 }
 0x156   : > { %v562_v60 = vmul.f32 0.4342945, %v561_v38 }
 0x158   : > { %v563_v61 = vmul.f32 -10.0, %v562_v60 }
 0x15a   : > { %564 = vst.msk [vmem:[%s1061_s2] sm:$0x3] %vm265_vm2, %v563_v61 }
 0x15b PF: > { %p15_p3 = scmp.ge.s32.totalorder %s838_s14, 4   ;;  %s1070_s9 = smov %s787_s10 }
 0x15c   : > { %s1071_s10 = smov %s791_s11  ;;  %s1072_s11 = smov %s848_s17 }
 0x15d   : > { %s1073_s12 = smov %s838_s14  ;;  %17 = sbr.rel (!%p15_p3) target bundleno = 5 (0x5), region = 85 }
 0x162   :  { %576 = vsyncpa [#allocation8], 1 }
 0x163   :  { %578 = vsyncpa [#allocation8 + $0x1], 1 }
 0x164   :  { %579 = vsyncpa [#allocation10], 1 }
 0x165   :  { %581 = vsyncpa [#allocation10 + $0x1], 1 }

</bundles_post_ra>
